<compile_context>
chip_gen: v5e
topology: v5e:2x2
jax: 0.10.0
libtpu: 0.0.40
codegen_flags: <defaults>
</compile_context>

<pallas_src>
import functools

import jax
import jax.numpy as jnp
from jax.experimental import pallas as pl
from jax.experimental.pallas import tpu as pltpu


def ca_layer_kernel(x_ref, w1_ref, b1_ref, w2_ref, b2_ref, o_ref, *,
                    native_rescale):
    # x_ref block: (Nb, C, HW) — lane-dense along HW.
    Nb, C, HW = x_ref.shape
    inv_hw = 1.0 / float(HW)

    # ---- Phase 1: global average pool (streaming reduction, f32 accum) ----
    pooled = jnp.sum(x_ref[...].astype(jnp.float32), axis=-1) * inv_hw   # (Nb, C)

    # ---- Phase 2: squeeze / excite ----
    w1 = w1_ref[...].astype(jnp.float32)    # (Cr, C)
    b1 = b1_ref[...].astype(jnp.float32)    # (1, Cr)
    w2 = w2_ref[...].astype(jnp.float32)    # (C, Cr)
    b2 = b2_ref[...].astype(jnp.float32)    # (1, C)

    if Nb >= 32:
        # Enough rows to make the MXU worthwhile; contract on the shared
        # channel axes directly (no in-kernel transpose needed).
        h = jax.lax.dot_general(pooled, w1, (((1,), (1,)), ((), ())),
                                preferred_element_type=jnp.float32) + b1
        h = jnp.maximum(h, 0.0)
        y = jax.lax.dot_general(h, w2, (((1,), (1,)), ((), ())),
                                preferred_element_type=jnp.float32) + b2
    else:
        # Tiny matvecs: keep the serial SE interlude off the MXU push/pop path.
        h = jnp.sum(pooled[:, None, :] * w1[None, :, :], axis=-1) + b1   # (Nb, Cr)
        h = jnp.maximum(h, 0.0)
        y = jnp.sum(h[:, None, :] * w2[None, :, :], axis=-1) + b2        # (Nb, C)
    y = jax.nn.sigmoid(y)                                                # (Nb, C)

    # ---- Phase 3: lane-broadcast channel rescale (re-read x_ref) ----
    if native_rescale:
        # bf16 VALU path (v6e / v7x): no up/down cast on the largest tensor.
        o_ref[...] = (x_ref[...] * y.astype(x_ref.dtype)[:, :, None]).astype(o_ref.dtype)
    else:
        o_ref[...] = (x_ref[...].astype(jnp.float32) * y[:, :, None]).astype(o_ref.dtype)


def _chip_props():
    """Per-generation tuning knobs (VMEM limit, TensorCore count, bf16 VALU)."""
    kind = ""
    try:
        kind = jax.devices()[0].device_kind.lower()
    except Exception:  # pragma: no cover - defensive
        pass
    if "v7" in kind:
        # 64 MiB VMEM / TC, 2 TCs per chip, bf16 VALU.
        return dict(vmem_limit=44 << 20, num_tc=2, bf16_valu=True)
    if "v6" in kind:
        # 128 MiB VMEM, single TC, bf16 VALU.
        return dict(vmem_limit=96 << 20, num_tc=1, bf16_valu=True)
    if "v5p" in kind or "v4" in kind:
        # Megacore chips: 2 TCs, generous VMEM, no bf16 VALU.
        return dict(vmem_limit=64 << 20, num_tc=2, bf16_valu=False)
    if "v5" in kind:
        # v5e: 128 MiB VMEM, single TC, no bf16 VALU.
        return dict(vmem_limit=96 << 20, num_tc=1, bf16_valu=False)
    # Unknown chip: conservative defaults.
    return dict(vmem_limit=32 << 20, num_tc=2, bf16_valu=False)


def ca_layer(x, w1, b1, w2, b2):
    """x: (N, C, H, W); w1: (C//r, C); b1: (C//r,); w2: (C, C//r); b2: (C,)."""
    N, C, H, W = x.shape
    Cr = w1.shape[0]
    HW = H * W
    itemsize = x.dtype.itemsize

    props = _chip_props()

    # Lane-dense layout for the Pallas call (reshape is free in XLA).
    # TODO(synk): if H*W % 128 != 0, the tail lanes reintroduce masked stores;
    # padding HW up to a multiple of 128 would recover full-width vst.
    x3 = x.reshape(N, C, HW)
    b1r = b1.reshape(1, Cr)
    b2r = b2.reshape(1, C)

    # ---- Block-size policy: derive from the VMEM limit ----
    weight_bytes = (Cr * C + Cr + C * Cr + C) * 4
    headroom = 2 << 20
    block_budget = max(1 << 20, (props["vmem_limit"] - weight_bytes - headroom) // 4)
    per_row_bytes = C * HW * itemsize
    nb = max(1, int(block_budget // per_row_bytes))
    nb = min(nb, N)
    if props["num_tc"] >= 2 and N >= 2:
        # Keep >= 2 grid steps so dimension_semantics="parallel" feeds both TCs.
        nb = min(nb, -(-N // 2))
    # Ragged N: balance the blocks so the padded tail is minimal.
    num_blocks = -(-N // nb)
    nb = -(-N // num_blocks)
    grid = (pl.cdiv(N, nb),)

    # bf16 inputs on chips with bf16 VALUs: rescale natively in bf16.
    native_rescale = bool(props["bf16_valu"]) and x.dtype == jnp.bfloat16

    cost = pl.CostEstimate(
        flops=int(2 * N * C * HW + 4 * N * C * Cr),
        transcendentals=int(N * (C + Cr)),
        bytes_accessed=int(2 * N * C * HW * itemsize + weight_bytes),
    )

    kernel = functools.partial(ca_layer_kernel, native_rescale=native_rescale)

    out3 = pl.pallas_call(
        kernel,
        out_shape=jax.ShapeDtypeStruct((N, C, HW), x.dtype),
        grid_spec=pltpu.PrefetchScalarGridSpec(
            num_scalar_prefetch=0,
            grid=grid,
            in_specs=[
                pl.BlockSpec((nb, C, HW), lambda n: (n, 0, 0)),
                pl.BlockSpec((Cr, C), lambda n: (0, 0)),
                pl.BlockSpec((1, Cr), lambda n: (0, 0)),
                pl.BlockSpec((C, Cr), lambda n: (0, 0)),
                pl.BlockSpec((1, C), lambda n: (0, 0)),
            ],
            out_specs=pl.BlockSpec((nb, C, HW), lambda n: (n, 0, 0)),
        ),
        compiler_params=pltpu.CompilerParams(
            dimension_semantics=("parallel",),
            vmem_limit_bytes=int(props["vmem_limit"]),
        ),
        cost_estimate=cost,
    )(x3, w1, b1r, w2, b2r)

    return out3.reshape(N, C, H, W)


def ca_layer_ref(x, w1, b1, w2, b2):
    # Pure-JAX reference of the PyTorch forward (NCHW, 1x1 convs as matmuls).
    pooled = jnp.mean(x.astype(jnp.float32), axis=(2, 3))    # (N, C)
    h = jnp.maximum(pooled @ w1.T + b1, 0.0)                 # (N, C//r)
    y = jax.nn.sigmoid(h @ w2.T + b2)                        # (N, C)
    return (x.astype(jnp.float32) * y[:, :, None, None]).astype(x.dtype)


if __name__ == "__main__":
    # Shapes consistent with CALayer(channel=32, reduction=4)
    N, C, H, W = 2, 32, 16, 16
    reduction = 4
    Cr = C // reduction

    key = jax.random.PRNGKey(0)
    kx, k1, kb1, k2, kb2 = jax.random.split(key, 5)

    x = jax.random.normal(kx, (N, C, H, W), dtype=jnp.float32)
    # Deterministic synthetic parameters (Conv2d 1x1 weights flattened to 2D).
    w1 = jax.random.normal(k1, (Cr, C), dtype=jnp.float32) * 0.1
    b1 = jax.random.normal(kb1, (Cr,), dtype=jnp.float32) * 0.1
    w2 = jax.random.normal(k2, (C, Cr), dtype=jnp.float32) * 0.1
    b2 = jax.random.normal(kb2, (C,), dtype=jnp.float32) * 0.1

    out = ca_layer(x, w1, b1, w2, b2)
    out = jax.block_until_ready(out)

    ref = ca_layer_ref(x, w1, b1, w2, b2)
    assert out.shape == (N, C, H, W)
    assert jnp.allclose(out, ref, atol=1e-5, rtol=1e-5), "mismatch vs reference"

    print("KERNEL_OK")
</pallas_src>

<mosaic_0001>
module attributes {stable_mosaic.version = 11 : i64} {
  func.func @ca_layer_kernel(%arg0: i32, %arg1: memref<1x32x256xf32, #tpu.memory_space<vmem>>, %arg2: memref<8x32xf32, #tpu.memory_space<vmem>>, %arg3: memref<1x8xf32, #tpu.memory_space<vmem>>, %arg4: memref<32x8xf32, #tpu.memory_space<vmem>>, %arg5: memref<1x32xf32, #tpu.memory_space<vmem>>, %arg6: memref<1x32x256xf32, #tpu.memory_space<vmem>>) attributes {dimension_semantics = [#tpu.dimension_semantics<parallel>], iteration_bounds = array<i64: 2>, scalar_prefetch = 0 : i64, scratch_operands = 0 : i64, tpu.core_type = #tpu.core_type<tc>, window_params = [{transform_indices = @transform_0, window_bounds = array<i64: 1, 32, 256>}, {pipeline_mode = #tpu.pipeline_mode<synchronous>, transform_indices = @transform_1, window_bounds = array<i64: 8, 32>}, {pipeline_mode = #tpu.pipeline_mode<synchronous>, transform_indices = @transform_2, window_bounds = array<i64: 1, 8>}, {pipeline_mode = #tpu.pipeline_mode<synchronous>, transform_indices = @transform_3, window_bounds = array<i64: 32, 8>}, {pipeline_mode = #tpu.pipeline_mode<synchronous>, transform_indices = @transform_4, window_bounds = array<i64: 1, 32>}, {transform_indices = @transform_5, window_bounds = array<i64: 1, 32, 256>}]} {
    %c0 = arith.constant 0 : index
    %c0_0 = arith.constant 0 : index
    %c0_1 = arith.constant 0 : index
    %0 = vector.load %arg1[%c0, %c0_0, %c0_1] : memref<1x32x256xf32, #tpu.memory_space<vmem>>, vector<1x32x256xf32>
    %cst = arith.constant dense<0.000000e+00> : vector<1x32xf32>
    %1 = vector.multi_reduction <add>, %0, %cst [2] : vector<1x32x256xf32> to vector<1x32xf32>
    %cst_2 = arith.constant 3.906250e-03 : f32
    %2 = vector.broadcast %cst_2 : f32 to vector<1x32xf32>
    %3 = arith.mulf %1, %2 : vector<1x32xf32>
    %c0_3 = arith.constant 0 : index
    %c0_4 = arith.constant 0 : index
    %4 = vector.load %arg2[%c0_3, %c0_4] : memref<8x32xf32, #tpu.memory_space<vmem>>, vector<8x32xf32>
    %c0_5 = arith.constant 0 : index
    %c0_6 = arith.constant 0 : index
    %5 = vector.load %arg3[%c0_5, %c0_6] : memref<1x8xf32, #tpu.memory_space<vmem>>, vector<1x8xf32>
    %c0_7 = arith.constant 0 : index
    %c0_8 = arith.constant 0 : index
    %6 = vector.load %arg4[%c0_7, %c0_8] : memref<32x8xf32, #tpu.memory_space<vmem>>, vector<32x8xf32>
    %c0_9 = arith.constant 0 : index
    %c0_10 = arith.constant 0 : index
    %7 = vector.load %arg5[%c0_9, %c0_10] : memref<1x32xf32, #tpu.memory_space<vmem>>, vector<1x32xf32>
    %8 = vector.shape_cast %3 : vector<1x32xf32> to vector<1x1x32xf32>
    %9 = vector.shape_cast %4 : vector<8x32xf32> to vector<1x8x32xf32>
    %10 = vector.broadcast %8 : vector<1x1x32xf32> to vector<1x8x32xf32>
    %11 = arith.mulf %10, %9 : vector<1x8x32xf32>
    %cst_11 = arith.constant dense<0.000000e+00> : vector<1x8xf32>
    %12 = vector.multi_reduction <add>, %11, %cst_11 [2] : vector<1x8x32xf32> to vector<1x8xf32>
    %13 = arith.addf %12, %5 : vector<1x8xf32>
    %cst_12 = arith.constant 0.000000e+00 : f32
    %14 = vector.broadcast %cst_12 : f32 to vector<1x8xf32>
    %15 = arith.maximumf %13, %14 : vector<1x8xf32>
    %16 = vector.shape_cast %15 : vector<1x8xf32> to vector<1x1x8xf32>
    %17 = vector.shape_cast %6 : vector<32x8xf32> to vector<1x32x8xf32>
    %18 = vector.broadcast %16 : vector<1x1x8xf32> to vector<1x32x8xf32>
    %19 = arith.mulf %18, %17 : vector<1x32x8xf32>
    %cst_13 = arith.constant dense<0.000000e+00> : vector<1x32xf32>
    %20 = vector.multi_reduction <add>, %19, %cst_13 [2] : vector<1x32x8xf32> to vector<1x32xf32>
    %21 = arith.addf %20, %7 : vector<1x32xf32>
    %22 = arith.negf %21 : vector<1x32xf32>
    %23 = math.exp %22 : vector<1x32xf32>
    %cst_14 = arith.constant 1.000000e+00 : f32
    %24 = vector.broadcast %cst_14 : f32 to vector<1x32xf32>
    %25 = arith.addf %24, %23 : vector<1x32xf32>
    %26 = arith.divf %24, %25 : vector<1x32xf32>
    %c0_15 = arith.constant 0 : index
    %c0_16 = arith.constant 0 : index
    %c0_17 = arith.constant 0 : index
    %27 = vector.load %arg1[%c0_15, %c0_16, %c0_17] : memref<1x32x256xf32, #tpu.memory_space<vmem>>, vector<1x32x256xf32>
    %28 = vector.shape_cast %26 : vector<1x32xf32> to vector<1x32x1xf32>
    %29 = vector.broadcast %28 : vector<1x32x1xf32> to vector<1x32x256xf32>
    %30 = arith.mulf %27, %29 : vector<1x32x256xf32>
    %c0_18 = arith.constant 0 : index
    %c0_19 = arith.constant 0 : index
    %c0_20 = arith.constant 0 : index
    %31 = vector.load %arg6[%c0_18, %c0_19, %c0_20] : memref<1x32x256xf32, #tpu.memory_space<vmem>>, vector<1x32x256xf32>
    tpu.vector_store %arg6[%c0_18, %c0_19, %c0_20], %30 {strides = array<i32>} : memref<1x32x256xf32, #tpu.memory_space<vmem>>, vector<1x32x256xf32>,
    return
  }
  func.func @transform_0(%arg0: i32) -> (i32, i32, i32) {
    %c0_i32 = arith.constant 0 : i32
    %c0_i32_0 = arith.constant 0 : i32
    %c0_i32_1 = arith.constant 0 : i32
    return %arg0, %c0_i32, %c0_i32_0 : i32, i32, i32
  }
  func.func @transform_1(%arg0: i32) -> (i32, i32) {
    %c0_i32 = arith.constant 0 : i32
    %c0_i32_0 = arith.constant 0 : i32
    %c0_i32_1 = arith.constant 0 : i32
    return %c0_i32, %c0_i32_0 : i32, i32
  }
  func.func @transform_2(%arg0: i32) -> (i32, i32) {
    %c0_i32 = arith.constant 0 : i32
    %c0_i32_0 = arith.constant 0 : i32
    %c0_i32_1 = arith.constant 0 : i32
    return %c0_i32, %c0_i32_0 : i32, i32
  }
  func.func @transform_3(%arg0: i32) -> (i32, i32) {
    %c0_i32 = arith.constant 0 : i32
    %c0_i32_0 = arith.constant 0 : i32
    %c0_i32_1 = arith.constant 0 : i32
    return %c0_i32, %c0_i32_0 : i32, i32
  }
  func.func @transform_4(%arg0: i32) -> (i32, i32) {
    %c0_i32 = arith.constant 0 : i32
    %c0_i32_0 = arith.constant 0 : i32
    %c0_i32_1 = arith.constant 0 : i32
    return %c0_i32, %c0_i32_0 : i32, i32
  }
  func.func @transform_5(%arg0: i32) -> (i32, i32, i32) {
    %c0_i32 = arith.constant 0 : i32
    %c0_i32_0 = arith.constant 0 : i32
    %c0_i32_1 = arith.constant 0 : i32
    return %arg0, %c0_i32, %c0_i32_0 : i32, i32, i32
  }
}

</mosaic_0001>

<bundles_post_ra>
// kernel: tpu_custom_call.1
= control target key start
LH: loop header
LB: loop body
LE: loop exit
PB: predicated region body
PF: predicated region fallthrough
CT: control target
= control target key end

     0   :  { %10 = vsyncpa [#allocation3], 0  ;;  %s2284_s0 = inlined_call_operand.hbm [shape: f32[2,32,256], index: 0, kind: input, shape index: {}]   ;;  %s2285_s1 = inlined_call_operand.vmem [shape: f32[8,32], index: 1, kind: input, shape index: {}]   ;;  %s2286_s2 = inlined_call_operand.vmem [shape: f32[1,8], index: 2, kind: input, shape index: {}]   ;;  %s2287_s3 = inlined_call_operand.vmem [shape: f32[32,8], index: 3, kind: input, shape index: {}]   ;;  %s2288_s4 = inlined_call_operand.vmem [shape: f32[1,32], index: 4, kind: input, shape index: {}]   ;;  %s2289_s5 = inlined_call_operand.hbm [shape: f32[2,32,256], index: 5, kind: output, shape index: {}]  }
   0x1   :  { %12 = vsyncpa [#allocation3 + $0x1], 0 }
   0x2   :  { %13 = vsyncpa [#allocation4], 0 }
   0x3   :  { %15 = vsyncpa [#allocation4 + $0x1], 0  ;;  %s1771_s18 = smov 0   ;;  %s1773_s19 = smov 0  }
   0x4   :  { %s1775_s20 = smov 0   ;;  %s1777_s21 = smov 0  }
   0x5 LB: > { %s1792_s22 = sadd.s32 4294967295, %s1734_s21   ;;  %s1495_s23 = sadd.s32 4294967294, %s1734_s21   ;;  %s1734_s21 = sphi %s1777_s21, %s2299_s21   ;;  %s1730_s20 = sphi %s1775_s20, %s2298_s20   ;;  %s1726_s19 = sphi %s1773_s19, %s2297_s19   ;;  %s1722_s18 = sphi %s1771_s18, %s2296_s18  }
   0x6   : > { %s1796_s24 = sadd.s32 1, %s1734_s21   ;;  %s28_s25 = sadd.s32 1, %s1730_s20 }
   0x7   : > { %s25_s26 = ssub.s32 %s1734_s21, %s1796_s24  ;;  %p35_p0 = scmp.ne.s32.totalorder %s1730_s20, %s1726_s19 }
   0x8   : > { %p26_p1 = scmp.eq.s32.totalorder %s25_s26, 0  ;;  %p36_p2 = scmp.eq.s32.totalorder %s1734_s21, 0 }
   0x9   : > { %p41_p3 = scmp.ne.s32.totalorder %s1726_s19, %s1722_s18  ;;  %p42_p4 = scmp.eq.s32.totalorder %s1792_s22, 0 }
   0xa   : > { %s1808_s27 = scalar_select %p26_p1, %s1730_s20, %s28_s25  }
   0xb   : > { %p1810_p5 = por %p36_p2, %p35_p0  ;;  %p1814_p6 = por %p42_p4, %p41_p3 }
   0xc   : > { %p149_p7 = scmp.eq.s32.totalorder %s1792_s22, 1  ;;  %p155_p8 = scmp.eq.s32.totalorder %s1495_s23, 1 }
   0xd   : > { %p1527_p10 = scmp.lt.s32.totalorder %s1734_s21, 2  ;;  %s187_s7 = sand.u32 1, %s1730_s20  }
   0xe   : > { %p1821_p11 = por %p149_p7, %p35_p0  ;;  %p1825_p12 = por %p155_p8, %p41_p3 }
   0xf   : > { %s1513_s8 = sshll.u32 %s1734_s21, 6  ;;  %s1498_s9 = sshll.u32 %s187_s7, 6 }
  0x10   : > { %s196_s12 = scalar_lea.hbm %s2284_s0, %s1513_s8  ;;  %s191_s14 = scalar_lea.vmem [#allocation2], %s1498_s9 }
  0x11   : > { %s197_s13 = sshll.u32 %s196_s12, 4  ;;  %s199_s15 = sshll.u32 %s191_s14, 4  ;;  %s198_s13 = int_to_ptr.hbm [resolvable:$true] %s197_s13  ;;  %s200_s15 = int_to_ptr.vmem [resolvable:$true] %s199_s15 }
  0x12   : > { %p1836_p13 = pnand %p1527_p10, %p1810_p5  ;;  %p1501_p0 = scmp.ge.s32.totalorder %s1734_s21, 1 }
  0x13   : > { %p207_p1 = scmp.lt.s32.totalorder %s1734_s21, 3  ;;  %s188_s17 = scalar_lea.sflag [#allocation3], %s187_s7 }
  0x14   : > { %s1638_s23 = sshra.s32 %s198_s13, 4  ;;  %p1642_p3 = pneg %p1836_p13  ;;  %s1639_s23 = int_to_ptr.hbm [resolvable:$true] %s1638_s23 }
  0x15   : > { %s1640_s25 = scalar_lea.hbm %s1639_s23, 64  ;;  %s1645_s28 = scalar_lea.hbm %s2284_s0, 128 }
  0x16   : > { %p1641_p2 = scmp.ne.s32.totalorder %s1639_s23, %s1640_s25  ;;  %p1646_p5 = scmp.lt.s32.totalorder %s1639_s23, %s2284_s0 }
  0x17   : > { %p1647_p8 = scmp.lt.s32.totalorder %s1645_s28, %s1640_s25 }
  0x18   : > { %p1643_p4 = pnand %p1642_p3, %p1641_p2 }
  0x19   : > { %p1648_p10 = por %p1647_p8, %p1646_p5 }
  0x1a   : > { %p1644_p7 = pneg %p1643_p4 }
  0x1c   : > { %p1649_p9 = pnand %p1648_p10, %p1644_p7 }
  0x1e   : > { %1652 = shalt.err (!%p1649_p9)
}
  0x1f   : > { %s1736_s7 = smov 256   ;;  %s1737_s11 = smov 16  }
  0x20   : > { %1522 = dma.hbm_to_vmem [thread:$0]  (!%p1836_p13), %s198_s13, 1024, %s200_s15, %s188_s17, %s1736_s7, %s1736_s7, %s1737_s11  }
  0x21   : > { %p208_p2 = pnand %p1501_p0, %p207_p1 }
  0x22   : > { %s1857_s12 = sand.u32 (!%p208_p2), 1, %s1726_s19  }
  0x23   : > { %211 = sbr.rel (%p208_p2) target bundleno = 1101 (0x44d), region = 40  ;;  %s1502_s14 = sshll.u32 (!%p208_p2), %s1857_s12, 6 }
  0x24   : > { %s214_s23 = scalar_lea.sflag (!%p208_p2), [#allocation3], %s1857_s12  ;;  %s1863_s25 = scalar_lea.vmem (!%p208_p2), [#allocation2], %s1502_s14 }
  0x28   : > { %1713 = dma.done.wait (%p1814_p6), %s214_s23, 1024  }
  0x29   : > { %1715 = vsyncadd (%p1814_p6), %s214_s23, 4294966272  ;;  %v278_v0 = vlaneseq  ;;  %v249_v3 = vld [vmem:[%s1863_s25 + $0x20] sm:$0xff]  ;;  %v250_v4 = vld [vmem:[%s1863_s25 + $0x28] sm:$0xff]  ;;  %v1738_v26 = vmov 0   ;;  %vm674_vm0 = vcmask 130112   ;;  %vm678_vm1 = vcmask 195712  }
  0x2a   : > { %v245_v5 = vld [vmem:[%s1863_s25] sm:$0xff]  ;;  %v259_v6 = vadd.f32 %v250_v4, %v249_v3  ;;  %v246_v7 = vld [vmem:[%s1863_s25 + $0x8] sm:$0xff]  ;;  %v251_v11 = vld [vmem:[%s1863_s25 + $0x30] sm:$0xff]  ;;  %vm682_vm2 = vcmask 261312   ;;  %vm733_vm3 = vcmask 1041409   ;;  %vm735_vm4 = vcmask 1042434  }
  0x2b   : > { %v1870_v1 = vshrl.u32 %v278_v0, 7  ;;  %v269_v8 = vld [vmem:[%s2285_s1] sm:$0xff]  ;;  %v253_v9 = vadd.f32 %v246_v7, %v245_v5  ;;  %v252_v12 = vld [vmem:[%s1863_s25 + $0x38] sm:$0xff]  ;;  %v247_v13 = vld [vmem:[%s1863_s25 + $0x10] sm:$0xff]  ;;  %vm737_vm5 = vcmask 1043459   ;;  %vm739_vm6 = vcmask 1044484  }
  0x2c   : > { %v277_v10 = vperm.slane %v269_v8, 0  ;;  %260 = vadd.xlane.f32.xlu1 %v259_v6  ;;  %v248_v14 = vld [vmem:[%s1863_s25 + $0x18] sm:$0xff]  ;;  %v262_v15 = vadd.f32 %v252_v12, %v251_v11  ;;  %v377_v18 = vperm.slane %v269_v8, 4  ;;  %v302_v19 = vperm.slane %v269_v8, 1  ;;  %s244_s13 = scalar_lea.vmem [#allocation5], %s1502_s14  ;;  %s1514_s15 = sshll.u32 %s1792_s22, 6 }
  0x2d   : > { %1566 = vset.pattern.permute.xlu2 %v1870_v1  ;;  %1580 = vset.pattern.permute.xlu0 %v1870_v1  ;;  %v1875_v2 = vadd.s32 24, %v1870_v1  ;;  %v256_v16 = vadd.f32 %v248_v14, %v247_v13  ;;  %v1890_v17 = vadd.s32 8, %v1870_v1  ;;  %v402_v20 = vperm.slane %v269_v8, 5  ;;  %s1418_s17 = scalar_lea.hbm %s2289_s5, %s1514_s15  ;;  %s1419_s26 = sshll.u32 %s244_s13, 4  ;;  %s1420_s26 = int_to_ptr.vmem [resolvable:$true] %s1419_s26 }
  0x2e   : > { %254 = vadd.xlane.f32.xlu0 %v253_v9  ;;  %v327_v21 = vperm.slane %v269_v8, 2  ;;  %v1898_v22 = vadd.s32 16, %v1870_v1  ;;  %v1903_v23 = vperm.slane %v269_v8, 6  ;;  %v352_v24 = vperm.slane %v269_v8, 3  ;;  %s1421_s8 = sshll.u32 %s1418_s17, 4  ;;  %s1407_s28 = scalar_lea.sflag [#allocation4], %s1857_s12  ;;  %s1422_s8 = int_to_ptr.hbm [resolvable:$true] %s1421_s8 }
  0x2f   : > { %1568 = vset.pattern.permute.xlu1 %v1875_v2  ;;  %v1910_v25 = vperm.slane %v269_v8, 7  ;;  %vm741_vm7 = vcmask 1045509   ;;  %vm743_vm8 = vcmask 1046534   ;;  %vm745_vm9 = vcmask 1047559   ;;  %s1682_s22 = sshra.s32 %s1422_s8, 4  ;;  %s1688_s11 = scalar_lea.hbm %s2289_s5, 128  ;;  %s1683_s22 = int_to_ptr.hbm [resolvable:$true] %s1682_s22 }
  0x30   : > { %vm748_vm10 = vcmask 261120   ;;  %vm1247_vm11 = vcmask 64512   ;;  %s1684_s9 = scalar_lea.hbm %s1683_s22, 64  ;;  %p1689_p0 = scmp.lt.s32.totalorder %s1683_s22, %s2289_s5 }
  0x31   : > { %p1685_p6 = scmp.ne.s32.totalorder %s1683_s22, %s1684_s9  ;;  %p1690_p1 = scmp.lt.s32.totalorder %s1688_s11, %s1684_s9 }
  0x33   : > { %p1686_p9 = pnand %p1685_p6, %p1821_p11  ;;  %p1691_p3 = por %p1690_p1, %p1689_p0 }
  0x34   : > { %263 = vadd.xlane.f32.xlu1 %v262_v15 }
  0x35   : > { %282 = vperm.xlu2 %1566, %v277_v10   ;;  %p1687_p13 = pneg %p1686_p9 }
  0x36   : > { %257 = vadd.xlane.f32.xlu0 %v256_v16 }
  0x37   : > { %p1692_p4 = pnand %p1691_p3, %p1687_p13 }
  0x3d   : > { %1567 = vset.pattern.permute.xlu2 %v1890_v17 }
  0x45   : > { %288 = vperm.xlu2 %1567, %v277_v10  }
  0x4a   : > { %382 = vperm.xlu0 %1580, %v377_v18  }
  0x4d   : > { %1569 = vset.pattern.permute.xlu2 %v1870_v1  ;;  %300 = vperm.xlu1 %1568, %v277_v10  }
  0x52   : > { %1585 = vset.pattern.permute.xlu0 %v1890_v17 }
  0x55   : > { %307 = vperm.xlu2 %1569, %v302_v19   ;;  %1573 = vset.pattern.permute.xlu1 %v1870_v1 }
  0x5a   : > { %413 = vperm.xlu0 %1585, %v402_v20  }
  0x5d   : > { %1570 = vset.pattern.permute.xlu2 %v1890_v17  ;;  %332 = vperm.xlu1 %1573, %v327_v21  }
  0x62   : > { %1586 = vset.pattern.permute.xlu0 %v1898_v22 }
  0x65   : > { %313 = vperm.xlu2 %1570, %v302_v19   ;;  %1575 = vset.pattern.permute.xlu1 %v1898_v22 }
  0x6a   : > { %294 = vperm.xlu0 %1586, %v277_v10  }
  0x6d   : > { %1571 = vset.pattern.permute.xlu2 %v1898_v22  ;;  %344 = vperm.xlu1 %1575, %v327_v21  }
  0x72   : > { %444 = vperm.xlu0 %1586, %v1903_v23  }
  0x75   : > { %319 = vperm.xlu2 %1571, %v302_v19   ;;  %1577 = vset.pattern.permute.xlu1 %v1890_v17 }
  0x7a   : > { %1591 = vset.pattern.permute.xlu0 %v1875_v2 }
  0x7d   : > { %1572 = vset.pattern.permute.xlu2 %v1875_v2  ;;  %363 = vperm.xlu1 %1577, %v352_v24  }
  0x82   : > { %350 = vperm.xlu0 %1591, %v327_v21  }
  0x85   : > { %325 = vperm.xlu2 %1572, %v302_v19   ;;  %1579 = vset.pattern.permute.xlu1 %v1875_v2 }
  0x8a   : > { %475 = vperm.xlu0 %1591, %v1910_v25  }
  0x8d   : > { %1574 = vset.pattern.permute.xlu2 %v1890_v17  ;;  %375 = vperm.xlu1 %1579, %v352_v24  }
  0x8f   : > { %v1917_v27 = vpop.permute.xlu2 %282 }
  0x92   : > { %1597 = vset.pattern.permute.xlu0 %v1738_v26 }
  0x95   : > { %338 = vperm.xlu2 %1574, %v327_v21   ;;  %1582 = vset.pattern.permute.xlu1 %v1898_v22 }
  0x9d   : > { %1576 = vset.pattern.permute.xlu2 %v1870_v1  ;;  %394 = vperm.xlu1 %1582, %v377_v18  }
  0x9f   : > { %v289_v28 = vpop.permute.xlu2 %288  ;;  %v261_v33 = vpop.xlane.xlu1 %260 }
  0xa0   : > { %v1952_v56 = vmul.f32 0.00390625, %v261_v33 }
  0xa1   : > { %v255_v29 = vpop.xlane.xlu0 %254 }
  0xa2   : > { %v1921_v30 = vmul.f32 0.00390625, %v255_v29 }
  0xa4   : > { %v509_v3 = vmul.f32 %v1917_v27, %v1921_v30 }
  0xa5   : > { %357 = vperm.xlu2 %1576, %v352_v24   ;;  %1584 = vset.pattern.permute.xlu1 %v1870_v1 }
  0xa7   : > { %v264_v35 = vpop.xlane.xlu1 %263 }
  0xa8   : > { %v1947_v51 = vmul.f32 0.00390625, %v264_v35 }
  0xa9   : > { %v258_v39 = vpop.xlane.xlu0 %257 }
  0xaa   : > { %v1936_v41 = vmul.f32 0.00390625, %v258_v39 }
  0xac   : > { %v510_v46 = vmul.f32 %v289_v28, %v1936_v41 }
  0xad   : > { %1578 = vset.pattern.permute.xlu2 %v1898_v22  ;;  %407 = vperm.xlu1 %1584, %v402_v20  }
  0xaf   : > { %v308_v31 = vpop.permute.xlu2 %307 }
  0xb0   : > { %v513_v32 = vmul.f32 %v308_v31, %v1921_v30 }
  0xb2   : > { %586 = vperm.xlu0 %1597, %v513_v32  }
  0xb5   : > { %369 = vperm.xlu2 %1578, %v352_v24   ;;  %1588 = vset.pattern.permute.xlu1 %v1875_v2 }
  0xbc   : > { %v1939_v44 = vpop.permute.xlu0 %382 }
  0xbd   : > { %1581 = vset.pattern.permute.xlu2 %v1890_v17  ;;  %425 = vperm.xlu1 %1588, %v402_v20  }
  0xbf   : > { %v1929_v34 = vpop.permute.xlu2 %313  ;;  %v301_v37 = vpop.permute.xlu1 %300 }
  0xc0   : > { %v512_v52 = vmul.f32 %v301_v37, %v1947_v51  ;;  %v514_v10 = vmul.f32 %v1929_v34, %v1936_v41 }
  0xc5   : > { %388 = vperm.xlu2 %1581, %v377_v18   ;;  %1590 = vset.pattern.permute.xlu1 %v1890_v17 }
  0xcc   : > { %v414_v47 = vpop.permute.xlu0 %413 }
  0xcd   : > { %1583 = vset.pattern.permute.xlu2 %v1875_v2  ;;  %438 = vperm.xlu1 %1590, %v1903_v23   ;;  %v530_v4 = vmul.f32 %v414_v47, %v1936_v41 }
  0xcf   : > { %v320_v36 = vpop.permute.xlu2 %319  ;;  %v333_v40 = vpop.permute.xlu1 %332 }
  0xd0   : > { %v515_v57 = vmul.f32 %v320_v36, %v1952_v56  ;;  %v517_v59 = vmul.f32 %v333_v40, %v1921_v30 }
  0xd5   : > { %400 = vperm.xlu2 %1583, %v377_v18   ;;  %1593 = vset.pattern.permute.xlu1 %v1870_v1 }
  0xdc   : > { %v295_v53 = vpop.permute.xlu0 %294 }
  0xdd   : > { %1587 = vset.pattern.permute.xlu2 %v1898_v22  ;;  %457 = vperm.xlu1 %1593, %v1910_v25   ;;  %v511_v7 = vmul.f32 %v295_v53, %v1952_v56 }
  0xdf   : > { %v326_v38 = vpop.permute.xlu2 %325  ;;  %v345_v45 = vpop.permute.xlu1 %344 }
  0xe0   : > { %v516_v13 = vmul.f32 %v326_v38, %v1947_v51  ;;  %v519_v16 = vmul.f32 %v345_v45, %v1952_v56  ;;  %v1612_v45 = vld [vmem:[%s2286_s2] ss:$0 sm:$0xff] }
  0xe4   : > { %v445_v58 = vpop.permute.xlu0 %444 }
  0xe5   : > { %419 = vperm.xlu2 %1587, %v402_v20   ;;  %1595 = vset.pattern.permute.xlu1 %v1898_v22  ;;  %v535_v19 = vmul.f32 %v445_v58, %v1952_v56 }
  0xed   : > { %1589 = vset.pattern.permute.xlu2 %v1870_v1  ;;  %469 = vperm.xlu1 %1595, %v1910_v25  }
  0xef   : > { %v339_v42 = vpop.permute.xlu2 %338  ;;  %v364_v48 = vpop.permute.xlu1 %363 }
  0xf0   : > { %v518_v43 = vmul.f32 %v339_v42, %v1936_v41  ;;  %v522_v20 = vmul.f32 %v364_v48, %v1936_v41  ;;  %v271_v48 = vld [vmem:[%s2287_s3] sm:$0xff] }
  0xf2   : > { %601 = vperm.xlu0 %1597, %v518_v43   ;;  %v1988_v43 = vand.u32 127, %v278_v0 }
  0xf4   : > { %v351_v62 = vpop.permute.xlu0 %350 }
  0xf5   : > { %432 = vperm.xlu2 %1589, %v1903_v23   ;;  %1598 = vset.pattern.permute.xlu1 %v1738_v26  ;;  %v520_v63 = vmul.f32 %v351_v62, %v1947_v51  ;;  %v774_v62 = vperm.slane %v271_v48, 1 }
  0xf6   : > { %577 = vperm.xlu1 %1598, %v510_v46  }
  0xfc   : > { %v476_v40 = vpop.permute.xlu0 %475 }
  0xfd   : > { %1592 = vset.pattern.permute.xlu2 %v1875_v2  ;;  %v540_v42 = vmul.f32 %v476_v40, %v1947_v51 }
  0xfe   : > { %583 = vperm.xlu1 %1598, %v512_v52  }
  0xff   : > { %v358_v49 = vpop.permute.xlu2 %357  ;;  %v376_v54 = vpop.permute.xlu1 %375 }
 0x100   : > { %v521_v50 = vmul.f32 %v358_v49, %v1921_v30  ;;  %v524_v55 = vmul.f32 %v376_v54, %v1947_v51  ;;  %v2004_v49 = vadd.s32 4294967280, %v1988_v43 }
 0x102   : > { %610 = vperm.xlu0 %1597, %v521_v50   ;;  %v2007_v50 = vadd.s32 4294967272, %v1988_v43 }
 0x105   : > { %450 = vperm.xlu2 %1592, %v1903_v23   ;;  %v525_v23 = vmul.f32 %v1939_v44, %v1921_v30 }
 0x106   : > { %592 = vperm.xlu1 %1598, %v515_v57  }
 0x10a   : > { %619 = vperm.xlu0 %1597, %v524_v55  }
 0x10d   : > { %1594 = vset.pattern.permute.xlu2 %v1890_v17 }
 0x10e   : > { %598 = vperm.xlu1 %1598, %v517_v59   ;;  %v795_v59 = vperm.slane %v271_v48, 4 }
 0x10f   : > { %v395_v60 = vpop.permute.xlu1 %394  ;;  %v370_v5 = vpop.permute.xlu2 %369 }
 0x110   : > { %v527_v61 = vmul.f32 %v395_v60, %v1952_v56  ;;  %v523_v6 = vmul.f32 %v370_v5, %v1952_v56  ;;  %v809_v5 = vperm.slane %v271_v48, 6 }
 0x112   : > { %628 = vperm.xlu0 %1597, %v527_v61  }
 0x115   : > { %463 = vperm.xlu2 %1594, %v1910_v25  }
 0x116   : > { %607 = vperm.xlu1 %1598, %v520_v63  }
 0x11a   : > { %637 = vperm.xlu0 %1597, %v530_v4  }
 0x11d   : > { %1596 = vset.pattern.permute.xlu2 %v1738_v26 }
 0x11e   : > { %574 = vperm.xlu2 %1596, %v509_v3   ;;  %616 = vperm.xlu1 %1598, %v523_v6  }
 0x11f   : > { %v389_v8 = vpop.permute.xlu2 %388  ;;  %v408_v11 = vpop.permute.xlu1 %407 }
 0x120   : > { %v526_v9 = vmul.f32 %v389_v8, %v1936_v41  ;;  %v529_v12 = vmul.f32 %v408_v11, %v1921_v30  ;;  %v788_v11 = vperm.slane %v271_v48, 3 }
 0x124   : > { %v587_v61 = vpop.permute.xlu0 %586 }
 0x125   : > { %v684_v3 = vperm.slane %v587_v61, %v1988_v43 }
 0x126   : > { %580 = vperm.xlu2 %1596, %v511_v7   ;;  %625 = vperm.xlu1 %1598, %v526_v9  }
 0x12e   : > { %589 = vperm.xlu2 %1596, %v514_v10   ;;  %634 = vperm.xlu1 %1598, %v529_v12  }
 0x12f   : > { %v426_v14 = vpop.permute.xlu1 %425  ;;  %v401_v18 = vpop.permute.xlu2 %400 }
 0x130   : > { %v532_v15 = vmul.f32 %v426_v14, %v1947_v51  ;;  %v528_v27 = vmul.f32 %v401_v18, %v1947_v51 }
 0x136   : > { %595 = vperm.xlu2 %1596, %v516_v13   ;;  %643 = vperm.xlu1 %1598, %v532_v15   ;;  %v2024_v13 = vld [vmem:[%s2287_s3 + $0x8] sm:$0xff] }
 0x137   : > { %v830_v15 = vperm.slane %v2024_v13, 1 }
 0x13e   : > { %604 = vperm.xlu2 %1596, %v519_v16   ;;  %652 = vperm.xlu1 %1598, %v535_v19   ;;  %v802_v16 = vperm.slane %v271_v48, 5  ;;  %v844_v19 = vperm.slane %v2024_v13, 3 }
 0x13f   : > { %v420_v21 = vpop.permute.xlu2 %419  ;;  %v439_v28 = vpop.permute.xlu1 %438 }
 0x140   : > { %v531_v29 = vmul.f32 %v420_v21, %v1952_v56  ;;  %v534_v34 = vmul.f32 %v439_v28, %v1936_v41  ;;  %v816_v21 = vperm.slane %v271_v48, 7  ;;  %v837_v28 = vperm.slane %v2024_v13, 2 }
 0x146   : > { %613 = vperm.xlu2 %1596, %v522_v20  }
 0x14e   : > { %622 = vperm.xlu2 %1596, %v525_v23  }
 0x14f   : > { %v433_v24 = vpop.permute.xlu2 %432  ;;  %v458_v31 = vpop.permute.xlu1 %457 }
 0x150   : > { %v533_v25 = vmul.f32 %v433_v24, %v1921_v30  ;;  %v537_v37 = vmul.f32 %v458_v31, %v1921_v30  ;;  %v1994_v30 = vadd.s32 4294967288, %v1988_v43  ;;  %v858_v24 = vperm.slane %v2024_v13, 5 }
 0x152   : > { %646 = vperm.xlu0 %1597, %v533_v25  }
 0x156   : > { %631 = vperm.xlu2 %1596, %v528_v27  }
 0x15e   : > { %640 = vperm.xlu2 %1596, %v531_v29   ;;  %v2040_v29 = vld [vmem:[%s2287_s3 + $0x10] sm:$0xff] }
 0x15f   : > { %v451_v32 = vpop.permute.xlu2 %450  ;;  %v470_v35 = vpop.permute.xlu1 %469 }
 0x160   : > { %v536_v33 = vmul.f32 %v451_v32, %v1947_v51  ;;  %v539_v36 = vmul.f32 %v470_v35, %v1952_v56  ;;  %v781_v51 = vperm.slane %v271_v48, 2  ;;  %v767_v56 = vperm.slane %v271_v48, 0 }
 0x161   : > { %v879_v32 = vperm.slane %v2040_v29, 0 }
 0x162   : > { %655 = vperm.xlu0 %1597, %v536_v33  }
 0x164   : > { %v602_v23 = vpop.permute.xlu0 %601 }
 0x166   : > { %649 = vperm.xlu2 %1596, %v534_v34   ;;  %v851_v34 = vperm.slane %v2024_v13, 4 }
 0x168   : > { %v578_v44 = vpop.permute.xlu1 %577 }
 0x169   : > { %v673_v46 = vperm.slane %v578_v44, %v1994_v30 }
 0x16a   : > { %664 = vperm.xlu0 %1597, %v539_v36   ;;  %v900_v36 = vperm.slane %v2040_v29, 3 }
 0x16e   : > { %658 = vperm.xlu2 %1596, %v537_v37  }
 0x16f   : > { %v464_v38 = vpop.permute.xlu2 %463 }
 0x170   : > { %v538_v39 = vmul.f32 %v464_v38, %v1936_v41  ;;  %v584_v52 = vpop.permute.xlu1 %583  ;;  %v865_v38 = vperm.slane %v2024_v13, 6 }
 0x171   : > { %v681_v55 = vperm.slane %v584_v52, %v2007_v50 }
 0x172   : > { %661 = vperm.xlu1 %1598, %v538_v39   ;;  %1599 = vset.pattern.permute.xlu0 %v1870_v1 }
 0x174   : > { %v611_v31 = vpop.permute.xlu0 %610 }
 0x176   : > { %667 = vperm.xlu2 %1596, %v540_v42   ;;  %v921_v42 = vperm.slane %v2040_v29, 6 }
 0x178   : > { %v575_v41 = vpop.permute.xlu2 %574  ;;  %v593_v4 = vpop.permute.xlu1 %592 }
 0x179   : > { %v671_v47 = vperm.slane %v575_v41, %v1988_v43  ;;  %v687_v7 = vperm.slane %v593_v4, %v2004_v49  ;;  %v2055_v41 = vld [vmem:[%s2287_s3 + $0x18] sm:$0xff]  ;;  %v698_v4 = vperm.slane %v611_v31, %v1988_v43 }
 0x17a   : > { %758 = vperm.xlu0 %1599, %v1612_v45   ;;  %1601 = vset.pattern.permute.xlu1 %v1870_v1  ;;  %v886_v45 = vperm.slane %v2040_v29, 1  ;;  %v963_v52 = vperm.slane %v2055_v41, 4 }
 0x17b   : > { %v675_v0 = vsel %vm674_vm0, %v673_v46, %v671_v47  ;;  %v942_v47 = vperm.slane %v2055_v41, 1 }
 0x17c   : > { %v2045_v37 = vpop.permute.xlu0 %619 }
 0x17e   : > { %1600 = vset.pattern.permute.xlu2 %v1870_v1 }
 0x180   : > { %v581_v53 = vpop.permute.xlu2 %580  ;;  %v599_v20 = vpop.permute.xlu1 %598 }
 0x181   : > { %v677_v54 = vperm.slane %v581_v53, %v2004_v49 }
 0x182   : > { %786 = vperm.xlu0 %1599, %v781_v51   ;;  %v907_v51 = vperm.slane %v2040_v29, 4 }
 0x183   : > { %v679_v57 = vsel %vm678_vm1, %v677_v54, %v675_v0 }
 0x184   : > { %v683_v58 = vsel %vm682_vm2, %v681_v55, %v679_v57  ;;  %v629_v44 = vpop.permute.xlu0 %628  ;;  %v984_v57 = vperm.slane %v2055_v41, 7 }
 0x186   : > { %772 = vperm.xlu2 %1600, %v767_v56   ;;  %v928_v56 = vperm.slane %v2040_v29, 7 }
 0x188   : > { %v590_v60 = vpop.permute.xlu2 %589  ;;  %v2034_v27 = vpop.permute.xlu1 %607 }
 0x189   : > { %v685_v63 = vperm.slane %v590_v60, %v1994_v30 }
 0x18a   : > { %800 = vperm.xlu0 %1599, %v795_v59  }
 0x18b   : > { %v686_v6 = vsel %vm674_vm0, %v685_v63, %v684_v3  ;;  %v949_v63 = vperm.slane %v2055_v41, 2  ;;  %v692_v3 = vperm.slane %v602_v23, %v1994_v30 }
 0x18c   : > { %v688_v10 = vsel %vm678_vm1, %v687_v7, %v686_v6  ;;  %v638_v48 = vpop.permute.xlu0 %637 }
 0x18e   : > { %779 = vperm.xlu2 %1600, %v774_v62  }
 0x190   : > { %v596_v8 = vpop.permute.xlu2 %595  ;;  %v617_v35 = vpop.permute.xlu1 %616 }
 0x191   : > { %v689_v9 = vperm.slane %v596_v8, %v2007_v50  ;;  %v701_v8 = vperm.slane %v617_v35, %v2004_v49  ;;  %v970_v35 = vperm.slane %v2055_v41, 5 }
 0x192   : > { %814 = vperm.xlu0 %1599, %v809_v5  }
 0x193   : > { %v690_v12 = vsel %vm682_vm2, %v689_v9, %v688_v10 }
 0x194   : > { %v2027_v14 = vsel %vm733_vm3, %v690_v12, %v683_v58  ;;  %v691_v58 = vperm.slane %v599_v20, %v1988_v43  ;;  %v713_v20 = vperm.slane %v638_v48, %v1994_v30 }
 0x196   : > { %793 = vperm.xlu2 %1600, %v788_v11   ;;  %v693_v7 = vsel %vm674_vm0, %v692_v3, %v691_v58  ;;  %v935_v3 = vperm.slane %v2055_v41, 0 }
 0x198   : > { %v2030_v18 = vpop.permute.xlu2 %604  ;;  %v626_v40 = vpop.permute.xlu1 %625 }
 0x199   : > { %v694_v61 = vperm.slane %v2030_v18, %v2004_v49  ;;  %v706_v12 = vperm.slane %v626_v40, %v1994_v30  ;;  %v703_v18 = vperm.slane %v2045_v37, %v2007_v50 }
 0x19a   : > { %835 = vperm.xlu0 %1599, %v830_v15  }
 0x19b   : > { %v695_v11 = vsel %vm678_vm1, %v694_v61, %v693_v7  ;;  %v872_v61 = vperm.slane %v2024_v13, 7 }
 0x19e   : > { %807 = vperm.xlu2 %1600, %v802_v16  }
 0x1a0   : > { %v614_v25 = vpop.permute.xlu2 %613  ;;  %v635_v0 = vpop.permute.xlu1 %634 }
 0x1a1   : > { %v699_v59 = vperm.slane %v614_v25, %v1994_v30  ;;  %v712_v10 = vperm.slane %v635_v0, %v1988_v43 }
 0x1a2   : > { %849 = vperm.xlu0 %1599, %v844_v19   ;;  %v696_v19 = vperm.slane %v2034_v27, %v2007_v50 }
 0x1a3   : > { %v700_v9 = vsel %vm674_vm0, %v699_v59, %v698_v4  ;;  %v956_v4 = vperm.slane %v2055_v41, 3 }
 0x1a4   : > { %v697_v31 = vsel %vm682_vm2, %v696_v19, %v695_v11 }
 0x1a6   : > { %821 = vperm.xlu2 %1600, %v816_v21   ;;  %v702_v21 = vsel %vm678_vm1, %v701_v8, %v700_v9 }
 0x1a8   : > { %v623_v33 = vpop.permute.xlu2 %622  ;;  %v644_v55 = vpop.permute.xlu1 %643 }
 0x1a9   : > { %v705_v5 = vperm.slane %v623_v33, %v1988_v43  ;;  %v717_v37 = vperm.slane %v644_v55, %v2007_v50 }
 0x1aa   : > { %863 = vperm.xlu0 %1599, %v858_v24  }
 0x1ab   : > { %v707_v23 = vsel %vm674_vm0, %v706_v12, %v705_v5 }
 0x1ae   : > { %842 = vperm.xlu2 %1600, %v837_v28   ;;  %v708_v28 = vperm.slane %v629_v44, %v2004_v49 }
 0x1b0   : > { %v2048_v39 = vpop.permute.xlu2 %631  ;;  %v653_v6 = vpop.permute.xlu1 %652 }
 0x1b1   : > { %v710_v24 = vperm.slane %v2048_v39, %v2007_v50  ;;  %v722_v39 = vperm.slane %v653_v6, %v2004_v49  ;;  %v977_v6 = vperm.slane %v2055_v41, 6 }
 0x1b2   : > { %884 = vperm.xlu0 %1599, %v879_v32   ;;  %v714_v32 = vsel %vm674_vm0, %v713_v20, %v712_v10 }
 0x1b6   : > { %856 = vperm.xlu2 %1600, %v851_v34  }
 0x1b8   : > { %v641_v46 = vpop.permute.xlu2 %640 }
 0x1b9   : > { %v715_v15 = vperm.slane %v641_v46, %v2004_v49 }
 0x1ba   : > { %905 = vperm.xlu0 %1599, %v900_v36   ;;  %v704_v36 = vsel %vm682_vm2, %v703_v18, %v702_v21 }
 0x1bb   : > { %v716_v27 = vsel %vm678_vm1, %v715_v15, %v714_v32 }
 0x1be   : > { %870 = vperm.xlu2 %1600, %v865_v38   ;;  %v709_v38 = vsel %vm678_vm1, %v708_v28, %v707_v23 }
 0x1bf   : > { %v711_v44 = vsel %vm682_vm2, %v710_v24, %v709_v38 }
 0x1c0   : > { %v650_v53 = vpop.permute.xlu2 %649 }
 0x1c1   : > { %v720_v25 = vperm.slane %v650_v53, %v1994_v30 }
 0x1c2   : > { %926 = vperm.xlu0 %1599, %v921_v42   ;;  %v736_v42 = vsel %vm735_vm4, %v697_v31, %v2027_v14 }
 0x1c4   : > { %v647_v54 = vpop.permute.xlu0 %646 }
 0x1c5   : > { %v719_v16 = vperm.slane %v647_v54, %v1988_v43 }
 0x1c6   : > { %891 = vperm.xlu2 %1600, %v886_v45  }
 0x1c7   : > { %v721_v33 = vsel %vm674_vm0, %v720_v25, %v719_v16 }
 0x1c8   : > { %v659_v62 = vpop.permute.xlu2 %658  ;;  %v723_v48 = vsel %vm678_vm1, %v722_v39, %v721_v33 }
 0x1c9   : > { %v726_v0 = vperm.slane %v659_v62, %v1988_v43  ;;  %v893_v62 = vperm.slane %v2040_v29, 2 }
 0x1ca   : > { %947 = vperm.xlu0 %1599, %v942_v47   ;;  %v718_v47 = vsel %vm682_vm2, %v717_v37, %v716_v27 }
 0x1ce   : > { %912 = vperm.xlu2 %1600, %v907_v51  }
 0x1d0   : > { %v668_v45 = vpop.permute.xlu2 %667 }
 0x1d1   : > { %v731_v55 = vperm.slane %v668_v45, %v2007_v50 }
 0x1d2   : > { %968 = vperm.xlu0 %1599, %v963_v52   ;;  %v738_v52 = vsel %vm737_vm5, %v704_v36, %v736_v42 }
 0x1d3   : > { %v740_v54 = vsel %vm739_vm6, %v711_v44, %v738_v52 }
 0x1d4   : > { %v656_v60 = vpop.permute.xlu0 %655  ;;  %v742_v58 = vsel %vm741_vm7, %v718_v47, %v740_v54 }
 0x1d5   : > { %v724_v34 = vperm.slane %v656_v60, %v2007_v50  ;;  %v823_v50 = vperm.slane %v2024_v13, 0 }
 0x1d6   : > { %933 = vperm.xlu2 %1600, %v928_v56  }
 0x1d7   : > { %v725_v53 = vsel %vm682_vm2, %v724_v34, %v723_v48 }
 0x1d8   : > { %v744_v59 = vsel %vm743_vm8, %v725_v53, %v742_v58 }
 0x1da   : > { %989 = vperm.xlu0 %1599, %v984_v57  }
 0x1dc   : > { %v665_v40 = vpop.permute.xlu0 %664 }
 0x1dd   : > { %v729_v14 = vperm.slane %v665_v40, %v2004_v49 }
 0x1de   : > { %954 = vperm.xlu2 %1600, %v949_v63   ;;  %v914_v63 = vperm.slane %v2040_v29, 5 }
 0x1e0   : > { %v773_v5 = vpop.permute.xlu2 %772 }
 0x1e2   : > { %1604 = vset.pattern.permute.xlu0 %v1738_v26 }
 0x1e4   : > { %v662_v46 = vpop.permute.xlu1 %661 }
 0x1e5   : > { %v727_v51 = vperm.slane %v662_v46, %v1994_v30 }
 0x1e6   : > { %975 = vperm.xlu2 %1600, %v970_v35  }
 0x1e7   : > { %v728_v56 = vsel %vm674_vm0, %v727_v51, %v726_v0 }
 0x1e8   : > { %v730_v57 = vsel %vm678_vm1, %v729_v14, %v728_v56  ;;  %v780_v7 = vpop.permute.xlu2 %779 }
 0x1e9   : > { %v732_v30 = vsel %vm682_vm2, %v731_v55, %v730_v57 }
 0x1ea   : > { %v746_v49 = vsel %vm745_vm9, %v732_v30, %v744_v59 }
 0x1eb   : > { %v749_v60 = vsel %vm748_vm10, %v746_v49, 0.0 }
 0x1ec   : > { %750 = vadd.xlane.f32.xlu1 %v749_v60  ;;  %v759_v8 = vpop.permute.xlu0 %758 }
 0x1ee   : > { %1602 = vset.pattern.permute.xlu2 %v1738_v26 }
 0x1f0   : > { %v794_v13 = vpop.permute.xlu2 %793 }
 0x1f4   : > { %v787_v9 = vpop.permute.xlu0 %786 }
 0x1f8   : > { %v808_v10 = vpop.permute.xlu2 %807 }
 0x1fc   : > { %v801_v11 = vpop.permute.xlu0 %800 }
 0x200   : > { %v822_v29 = vpop.permute.xlu2 %821 }
 0x204   : > { %v815_v12 = vpop.permute.xlu0 %814 }
 0x205   : > { %828 = vperm.xlu1 %1601, %v823_v50  }
 0x208   : > { %v843_v15 = vpop.permute.xlu2 %842 }
 0x20c   : > { %v836_v18 = vpop.permute.xlu0 %835 }
 0x20d   : > { %877 = vperm.xlu1 %1601, %v872_v61  }
 0x210   : > { %v857_v24 = vpop.permute.xlu2 %856 }
 0x214   : > { %v850_v25 = vpop.permute.xlu0 %849 }
 0x215   : > { %898 = vperm.xlu1 %1601, %v893_v62  }
 0x218   : > { %v871_v27 = vpop.permute.xlu2 %870 }
 0x21c   : > { %v864_v33 = vpop.permute.xlu0 %863 }
 0x21d   : > { %919 = vperm.xlu1 %1601, %v914_v63  }
 0x220   : > { %v892_v39 = vpop.permute.xlu2 %891 }
 0x224   : > { %v885_v42 = vpop.permute.xlu0 %884 }
 0x225   : > { %940 = vperm.xlu1 %1601, %v935_v3  }
 0x228   : > { %v913_v48 = vpop.permute.xlu2 %912 }
 0x22c   : > { %v906_v52 = vpop.permute.xlu0 %905 }
 0x22d   : > { %961 = vperm.xlu1 %1601, %v956_v4  }
 0x230   : > { %v934_v55 = vpop.permute.xlu2 %933 }
 0x234   : > { %v927_v56 = vpop.permute.xlu0 %926 }
 0x235   : > { %982 = vperm.xlu1 %1601, %v977_v6  }
 0x238   : > { %v955_v49 = vpop.permute.xlu2 %954 }
 0x23c   : > { %v948_v60 = vpop.permute.xlu0 %947 }
 0x23d   : > { %1603 = vset.pattern.permute.xlu1 %v1738_v26 }
 0x25f   : > { %v751_v16 = vpop.xlane.xlu1 %750 }
 0x260   : > { %v761_v19 = vadd.f32 %v759_v8, %v751_v16  ;;  %v2166_v16 = vld [vmem:[%s2288_s4] ss:$0 sm:$0xff] }
 0x262   : > { %v2127_v20 = vmax.f32 %v761_v19, 0.0 }
 0x264   : > { %v1023_v21 = vmul.f32 %v773_v5, %v2127_v20  ;;  %v1024_v41 = vmul.f32 %v780_v7, %v2127_v20  ;;  %v1025_v23 = vmul.f32 %v787_v9, %v2127_v20  ;;  %v1027_v28 = vmul.f32 %v801_v11, %v2127_v20  ;;  %v969_v5 = vpop.permute.xlu0 %968  ;;  %v976_v7 = vpop.permute.xlu2 %975 }
 0x265   : > { %v1026_v31 = vmul.f32 %v794_v13, %v2127_v20  ;;  %v1030_v32 = vmul.f32 %v822_v29, %v2127_v20  ;;  %v1029_v34 = vmul.f32 %v815_v12, %v2127_v20  ;;  %v1028_v35 = vmul.f32 %v808_v10, %v2127_v20 }
 0x266   : > { %1091 = vperm.xlu1 %1603, %v1024_v41   ;;  %1088 = vperm.xlu2 %1602, %v1023_v21   ;;  %v1033_v36 = vmul.f32 %v843_v15, %v2127_v20  ;;  %v1032_v38 = vmul.f32 %v836_v18, %v2127_v20  ;;  %v1036_v44 = vmul.f32 %v864_v33, %v2127_v20 }
 0x267   : > { %1094 = vperm.xlu0 %1604, %v1025_v23   ;;  %v1035_v46 = vmul.f32 %v857_v24, %v2127_v20  ;;  %v1034_v47 = vmul.f32 %v850_v25, %v2127_v20  ;;  %v1039_v0 = vmul.f32 %v885_v42, %v2127_v20  ;;  %v1037_v14 = vmul.f32 %v871_v27, %v2127_v20 }
 0x268   : > { %v1040_v58 = vmul.f32 %v892_v39, %v2127_v20  ;;  %v1049_v50 = vmul.f32 %v955_v49, %v2127_v20  ;;  %v1048_v61 = vmul.f32 %v948_v60, %v2127_v20  ;;  %v1042_v62 = vmul.f32 %v906_v52, %v2127_v20 }
 0x269   : > { %v1043_v3 = vmul.f32 %v913_v48, %v2127_v20  ;;  %v1051_v6 = vmul.f32 %v969_v5, %v2127_v20  ;;  %v1052_v8 = vmul.f32 %v976_v7, %v2127_v20  ;;  %v1045_v9 = vmul.f32 %v927_v56, %v2127_v20 }
 0x26a   : > { %v1046_v11 = vmul.f32 %v934_v55, %v2127_v20 }
 0x26c   : > { %v990_v12 = vpop.permute.xlu0 %989 }
 0x26d   : > { %v1054_v15 = vmul.f32 %v990_v12, %v2127_v20 }
 0x26e   : > { %1100 = vperm.xlu1 %1603, %v1027_v28   ;;  %1097 = vperm.xlu2 %1602, %v1026_v31  }
 0x26f   : > { %1109 = vperm.xlu0 %1604, %v1030_v32  }
 0x276   : > { %1106 = vperm.xlu1 %1603, %v1029_v34   ;;  %1103 = vperm.xlu2 %1602, %v1028_v35  }
 0x277   : > { %v829_v37 = vpop.permute.xlu1 %828  ;;  %1118 = vperm.xlu0 %1604, %v1033_v36  }
 0x278   : > { %v1031_v40 = vmul.f32 %v829_v37, %v2127_v20 }
 0x27e   : > { %1115 = vperm.xlu1 %1603, %v1032_v38   ;;  %1112 = vperm.xlu2 %1602, %v1031_v40  }
 0x27f   : > { %v878_v45 = vpop.permute.xlu1 %877  ;;  %1127 = vperm.xlu0 %1604, %v1036_v44  }
 0x280   : > { %v1038_v53 = vmul.f32 %v878_v45, %v2127_v20 }
 0x286   : > { %1124 = vperm.xlu1 %1603, %v1035_v46   ;;  %1121 = vperm.xlu2 %1602, %v1034_v47  }
 0x287   : > { %v899_v51 = vpop.permute.xlu1 %898  ;;  %1136 = vperm.xlu0 %1604, %v1039_v0  }
 0x288   : > { %v1041_v57 = vmul.f32 %v899_v51, %v2127_v20 }
 0x28e   : > { %1133 = vperm.xlu1 %1603, %v1038_v53   ;;  %1130 = vperm.xlu2 %1602, %v1037_v14  }
 0x28f   : > { %v920_v54 = vpop.permute.xlu1 %919 }
 0x290   : > { %v1044_v13 = vmul.f32 %v920_v54, %v2127_v20 }
 0x296   : > { %1142 = vperm.xlu1 %1603, %v1041_v57   ;;  %1139 = vperm.xlu2 %1602, %v1040_v58  }
 0x297   : > { %v941_v30 = vpop.permute.xlu1 %940 }
 0x298   : > { %v1047_v59 = vmul.f32 %v941_v30, %v2127_v20 }
 0x29a   : > { %1160 = vperm.xlu0 %1604, %v1047_v59  }
 0x29e   : > { %1166 = vperm.xlu1 %1603, %v1049_v50   ;;  %1163 = vperm.xlu2 %1602, %v1048_v61  }
 0x29f   : > { %v962_v63 = vpop.permute.xlu1 %961 }
 0x2a0   : > { %v1050_v4 = vmul.f32 %v962_v63, %v2127_v20 }
 0x2a2   : > { %1145 = vperm.xlu0 %1604, %v1042_v62  }
 0x2a6   : > { %1148 = vperm.xlu1 %1603, %v1043_v3   ;;  %1169 = vperm.xlu2 %1602, %v1050_v4  }
 0x2a7   : > { %v983_v10 = vpop.permute.xlu1 %982 }
 0x2a8   : > { %v1053_v29 = vmul.f32 %v983_v10, %v2127_v20 }
 0x2aa   : > { %1172 = vperm.xlu0 %1604, %v1051_v6  }
 0x2ae   : > { %1175 = vperm.xlu1 %1603, %v1052_v8   ;;  %1151 = vperm.xlu2 %1602, %v1044_v13  }
 0x2b2   : > { %1154 = vperm.xlu0 %1604, %v1045_v9  }
 0x2b6   : > { %1157 = vperm.xlu1 %1603, %v1046_v11   ;;  %1178 = vperm.xlu2 %1602, %v1053_v29  }
 0x2ba   : > { %1181 = vperm.xlu0 %1604, %v1054_v15  }
 0x2be   : > { %1605 = vset.pattern.permute.xlu1 %v1870_v1  ;;  %1606 = vset.pattern.permute.xlu2 %v1890_v17 }
 0x2c0   : > { %v1089_v18 = vpop.permute.xlu2 %1088 }
 0x2c1   : > { %v1183_v17 = vperm.slane %v1089_v18, %v1988_v43 }
 0x2c2   : > { %1607 = vset.pattern.permute.xlu0 %v1898_v22 }
 0x2c6   : > { %1266 = vperm.xlu1 %1605, %v2166_v16  }
 0x2c8   : > { %v1098_v19 = vpop.permute.xlu2 %1097 }
 0x2ce   : > { %1608 = vset.pattern.permute.xlu1 %v1875_v2  ;;  %v1186_v2 = vperm.slane %v1098_v19, %v1988_v43 }
 0x2d0   : > { %v1104_v20 = vpop.permute.xlu2 %1103 }
 0x2d1   : > { %v1188_v34 = vperm.slane %v1104_v20, %v1988_v43 }
 0x2d8   : > { %v1092_v21 = vpop.permute.xlu1 %1091  ;;  %v1113_v28 = vpop.permute.xlu2 %1112 }
 0x2d9   : > { %v1184_v41 = vperm.slane %v1092_v21, %v1988_v43  ;;  %v1095_v1 = vpop.permute.xlu0 %1094  ;;  %v1191_v0 = vperm.slane %v1113_v28, %v1988_v43 }
 0x2da   : > { %v1185_v23 = vperm.slane %v1095_v1, %v1988_v43 }
 0x2db   : > { %v1215_v24 = vsel %vm733_vm3, %v1184_v41, %v1183_v17 }
 0x2dc   : > { %v1216_v22 = vsel %vm735_vm4, %v1185_v23, %v1215_v24 }
 0x2dd   : > { %v1217_v32 = vsel %vm737_vm5, %v1186_v2, %v1216_v22 }
 0x2e0   : > { %v1101_v25 = vpop.permute.xlu1 %1100  ;;  %v1122_v42 = vpop.permute.xlu2 %1121 }
 0x2e1   : > { %v1187_v31 = vperm.slane %v1101_v25, %v1988_v43  ;;  %v1110_v27 = vpop.permute.xlu0 %1109  ;;  %v1194_v54 = vperm.slane %v1122_v42, %v1988_v43 }
 0x2e2   : > { %v1190_v37 = vperm.slane %v1110_v27, %v1988_v43 }
 0x2e3   : > { %v1218_v33 = vsel %vm739_vm6, %v1187_v31, %v1217_v32 }
 0x2e4   : > { %v1219_v38 = vsel %vm741_vm7, %v1188_v34, %v1218_v33 }
 0x2e8   : > { %v1107_v35 = vpop.permute.xlu1 %1106  ;;  %v1131_v52 = vpop.permute.xlu2 %1130 }
 0x2e9   : > { %v1189_v36 = vperm.slane %v1107_v35, %v1988_v43  ;;  %v1119_v45 = vpop.permute.xlu0 %1118  ;;  %v1197_v49 = vperm.slane %v1131_v52, %v1988_v43 }
 0x2ea   : > { %v1193_v51 = vperm.slane %v1119_v45, %v1988_v43 }
 0x2eb   : > { %v1220_v39 = vsel %vm743_vm8, %v1189_v36, %v1219_v38 }
 0x2ec   : > { %v1221_v40 = vsel %vm745_vm9, %v1190_v37, %v1220_v39 }
 0x2ed   : > { %v1248_v44 = vsel %vm1247_vm11, %v1221_v40, 0.0 }
 0x2ee   : > { %1249 = vadd.xlane.f32.xlu2 %v1248_v44 }
 0x2f0   : > { %v1116_v46 = vpop.permute.xlu1 %1115  ;;  %v1140_v50 = vpop.permute.xlu2 %1139 }
 0x2f1   : > { %v1192_v47 = vperm.slane %v1116_v46, %v1988_v43  ;;  %v1128_v56 = vpop.permute.xlu0 %1127  ;;  %v1200_v19 = vperm.slane %v1140_v50, %v1988_v43 }
 0x2f2   : > { %v1196_v30 = vperm.slane %v1128_v56, %v1988_v43 }
 0x2f3   : > { %v1222_v48 = vsel %vm733_vm3, %v1192_v47, %v1191_v0 }
 0x2f4   : > { %v1223_v53 = vsel %vm735_vm4, %v1193_v51, %v1222_v48 }
 0x2f5   : > { %v1224_v57 = vsel %vm737_vm5, %v1194_v54, %v1223_v53 }
 0x2f8   : > { %v1125_v14 = vpop.permute.xlu1 %1124  ;;  %v1164_v6 = vpop.permute.xlu2 %1163 }
 0x2f9   : > { %v1195_v55 = vperm.slane %v1125_v14, %v1988_v43  ;;  %v1137_v3 = vpop.permute.xlu0 %1136  ;;  %v1208_v17 = vperm.slane %v1164_v6, %v1988_v43 }
 0x2fa   : > { %v1199_v29 = vperm.slane %v1137_v3, %v1988_v43 }
 0x2fb   : > { %v1225_v58 = vsel %vm739_vm6, %v1195_v55, %v1224_v57 }
 0x2fc   : > { %v1226_v59 = vsel %vm741_vm7, %v1196_v30, %v1225_v58  ;;  %v1229_v23 = vsel %vm733_vm3, %v1200_v19, %v1199_v29 }
 0x2fd   : > { %v1227_v62 = vsel %vm743_vm8, %v1197_v49, %v1226_v59 }
 0x300   : > { %v1134_v60 = vpop.permute.xlu1 %1133  ;;  %v1170_v9 = vpop.permute.xlu2 %1169 }
 0x301   : > { %v1198_v61 = vperm.slane %v1134_v60, %v1988_v43  ;;  %v1210_v33 = vperm.slane %v1170_v9, %v1988_v43 }
 0x303   : > { %v1228_v63 = vsel %vm745_vm9, %v1198_v61, %v1227_v62 }
 0x304   : > { %v1251_v4 = vsel %vm1247_vm11, %v1228_v63, 0.0 }
 0x305   : > { %1252 = vadd.xlane.f32.xlu1 %v1251_v4 }
 0x308   : > { %v1143_v5 = vpop.permute.xlu1 %1142  ;;  %v1152_v12 = vpop.permute.xlu2 %1151 }
 0x309   : > { %v1201_v15 = vperm.slane %v1143_v5, %v1988_v43  ;;  %v1204_v34 = vperm.slane %v1152_v12, %v1988_v43 }
 0x30b   : > { %v1230_v24 = vsel %vm735_vm4, %v1201_v15, %v1229_v23 }
 0x30c   : > { %v1161_v7 = vpop.permute.xlu0 %1160 }
 0x30d   : > { %v1207_v21 = vperm.slane %v1161_v7, %v1988_v43 }
 0x30f   : > { %v1236_v28 = vsel %vm733_vm3, %v1208_v17, %v1207_v21 }
 0x310   : > { %v1167_v8 = vpop.permute.xlu1 %1166  ;;  %v1179_v37 = vpop.permute.xlu2 %1178 }
 0x311   : > { %v1209_v41 = vperm.slane %v1167_v8, %v1988_v43  ;;  %v1213_v47 = vperm.slane %v1179_v37, %v1988_v43 }
 0x313   : > { %v1237_v31 = vsel %vm735_vm4, %v1209_v41, %v1236_v28 }
 0x314   : > { %v1146_v13 = vpop.permute.xlu0 %1145  ;;  %v1238_v38 = vsel %vm737_vm5, %v1210_v33, %v1237_v31 }
 0x315   : > { %v1202_v20 = vperm.slane %v1146_v13, %v1988_v43 }
 0x317   : > { %v1231_v22 = vsel %vm737_vm5, %v1202_v20, %v1230_v24 }
 0x318   : > { %v1149_v10 = vpop.permute.xlu1 %1148 }
 0x319   : > { %v1203_v1 = vperm.slane %v1149_v10, %v1988_v43 }
 0x31b   : > { %v1232_v2 = vsel %vm739_vm6, %v1203_v1, %v1231_v22 }
 0x31c   : > { %v1173_v11 = vpop.permute.xlu0 %1172  ;;  %v1233_v40 = vsel %vm741_vm7, %v1204_v34, %v1232_v2 }
 0x31d   : > { %v1211_v32 = vperm.slane %v1173_v11, %v1988_v43 }
 0x31e   : > { %1284 = vperm.xlu1 %1608, %v2166_v16  }
 0x31f   : > { %v1239_v42 = vsel %vm739_vm6, %v1211_v32, %v1238_v38 }
 0x320   : > { %v1176_v18 = vpop.permute.xlu1 %1175 }
 0x321   : > { %v1212_v35 = vperm.slane %v1176_v18, %v1988_v43 }
 0x323   : > { %v1240_v45 = vsel %vm741_vm7, %v1212_v35, %v1239_v42 }
 0x324   : > { %v1155_v25 = vpop.permute.xlu0 %1154  ;;  %v1241_v52 = vsel %vm743_vm8, %v1213_v47, %v1240_v45 }
 0x325   : > { %v1205_v27 = vperm.slane %v1155_v25, %v1988_v43 }
 0x326   : > { %1610 = vset.pattern.permute.xlu1 %v1738_v26 }
 0x327   : > { %v1234_v44 = vsel %vm743_vm8, %v1205_v27, %v1233_v40 }
 0x328   : > { %v1158_v36 = vpop.permute.xlu1 %1157 }
 0x329   : > { %v1206_v39 = vperm.slane %v1158_v36, %v1988_v43 }
 0x32b   : > { %v1235_v46 = vsel %vm745_vm9, %v1206_v39, %v1234_v44 }
 0x32c   : > { %v1182_v0 = vpop.permute.xlu0 %1181  ;;  %v1254_v48 = vsel %vm1247_vm11, %v1235_v46, 0.0 }
 0x32d   : > { %v1214_v51 = vperm.slane %v1182_v0, %v1988_v43  ;;  %1255 = vadd.xlane.f32.xlu0 %v1254_v48 }
 0x32f   : > { %v1242_v53 = vsel %vm745_vm9, %v1214_v51, %v1241_v52 }
 0x330   : > { %v1257_v14 = vsel %vm1247_vm11, %v1242_v53, 0.0 }
 0x331   : > { %1258 = vadd.xlane.f32.xlu2 %v1257_v14 }
 0x338   : > { %v1267_v54 = vpop.permute.xlu1 %1266 }
 0x341   : > { %1278 = vperm.xlu0 %1607, %v2166_v16  }
 0x349   : > { %1272 = vperm.xlu2 %1606, %v2166_v16   ;;  %1611 = vset.pattern.permute.xlu0 %v1738_v26 }
 0x351   : > { %1609 = vset.pattern.permute.xlu2 %v1738_v26 }
 0x361   : > { %v1250_v55 = vpop.xlane.xlu2 %1249 }
 0x362   : > { %v1290_v56 = vadd.f32 %v1267_v54, %v1250_v55  ;;  %v1630_v55 = vld [vmem:[%s1863_s25] sm:$0xff] }
 0x364   : > { %v1504_v43 = vmul.f32 -1.442695, %v1290_v56 }
 0x366   : > { %1614 = vpow2.f32 %v1504_v43  ;;  %v1631_v43 = vld [vmem:[%s1863_s25 + $0x8] sm:$0xff] }
 0x36c   : > { %v1615_v57 = vpop.eup %1614 }
 0x36d   : > { %v1306_v58 = vadd.f32 1.0, %v1615_v57 }
 0x36f   : > { %1616 = vrcp.f32 %v1306_v58  ;;  %v1321_v60 = vand.u32 2147483648, %v1306_v58  ;;  %v1319_v61 = vand.u32 2147483647, %v1306_v58  ;;  %vm1315_vm13 = vweird.f32 %v1306_v58 }
 0x371   : > { %v1322_v62 = vor.u32 1.1754944e-38, %v1321_v60  ;;  %vm1320_vm15 = vcmp.eq.f32.partialorder %v1319_v61, 8.507059e+37  ;;  %v1634_v61 = vld [vmem:[%s1863_s25 + $0x10] sm:$0xff] }
 0x375   : > { %v1617_v30 = vpop.eup %1616 }
 0x376   : > { %v1311_v59 = vmul.f32 %v1617_v30, %v1306_v58  ;;  %vm1316_vm12 = vweird.f32 %v1617_v30 }
 0x377   : > { %vm1317_vm14 = vmor %vm1315_vm13, %vm1316_vm12 }
 0x378   : > { %v1312_v49 = vsub.f32 1.0, %v1311_v59  ;;  %v1253_v3 = vpop.xlane.xlu1 %1252 }
 0x37a   : > { %v1313_v50 = vmul.f32 %v1617_v30, %v1312_v49  ;;  %v1633_v49 = vld [vmem:[%s1863_s25 + $0x28] sm:$0xff] }
 0x37c   : > { %v1314_v16 = vadd.f32 %v1617_v30, %v1313_v50 }
 0x37e   : > { %v1318_v26 = vsel %vm1317_vm14, %v1617_v30, %v1314_v16  ;;  %v1632_v30 = vld [vmem:[%s1863_s25 + $0x20] sm:$0xff] }
 0x37f   : > { %v1323_v63 = vsel %vm1320_vm15, %v1322_v62, %v1318_v26  ;;  %v1635_v62 = vld [vmem:[%s1863_s25 + $0x18] sm:$0xff] }
 0x380   : > { %1372 = vperm.xlu2 %1609, %v1323_v63  }
 0x390   : > { %v1285_v4 = vpop.permute.xlu1 %1284 }
 0x3a0   : > { %v1256_v8 = vpop.xlane.xlu0 %1255 }
 0x3a4   : > { %v1259_v5 = vpop.xlane.xlu2 %1258 }
 0x3a5   : > { %v1293_v6 = vadd.f32 %v1285_v4, %v1259_v5  ;;  %v1637_v5 = vld [vmem:[%s1863_s25 + $0x38] sm:$0xff] }
 0x3a7   : > { %v1507_v7 = vmul.f32 -1.442695, %v1293_v6 }
 0x3a9   : > { %1618 = vpow2.f32 %v1507_v7 }
 0x3ac   : > { %v1273_v13 = vpop.permute.xlu2 %1272 }
 0x3ad   : > { %v1291_v9 = vadd.f32 %v1273_v13, %v1253_v3  ;;  %v1636_v3 = vld [vmem:[%s1863_s25 + $0x30] sm:$0xff] }
 0x3af   : > { %v1619_v10 = vpop.eup %1618  ;;  %v1505_v11 = vmul.f32 -1.442695, %v1291_v9 }
 0x3b0   : > { %v1309_v29 = vadd.f32 1.0, %v1619_v10 }
 0x3b1   : > { %1620 = vpow2.f32 %v1505_v11 }
 0x3b2   : > { %1622 = vrcp.f32 %v1309_v29  ;;  %v1366_v45 = vand.u32 2147483648, %v1309_v29  ;;  %vm1360_vm6 = vweird.f32 %v1309_v29  ;;  %v1364_v46 = vand.u32 2147483647, %v1309_v29 }
 0x3b3   : > { %v1279_v12 = vpop.permute.xlu0 %1278 }
 0x3b4   : > { %v1292_v15 = vadd.f32 %v1279_v12, %v1256_v8  ;;  %v1367_v52 = vor.u32 1.1754944e-38, %v1366_v45  ;;  %vm1365_vm11 = vcmp.eq.f32.partialorder %v1364_v46, 8.507059e+37 }
 0x3b6   : > { %v1506_v18 = vmul.f32 -1.442695, %v1292_v15 }
 0x3b7   : > { %v1621_v19 = vpop.eup %1620 }
 0x3b8   : > { %v1307_v21 = vadd.f32 1.0, %v1621_v19  ;;  %1624 = vpow2.f32 %v1506_v18  ;;  %v1623_v20 = vpop.eup %1622 }
 0x3b9   : > { %v1356_v17 = vmul.f32 %v1623_v20, %v1309_v29  ;;  %vm1361_vm4 = vweird.f32 %v1623_v20 }
 0x3ba   : > { %1626 = vrcp.f32 %v1307_v21  ;;  %v1336_v22 = vand.u32 2147483648, %v1307_v21  ;;  %v1334_v2 = vand.u32 2147483647, %v1307_v21  ;;  %vm1330_vm1 = vweird.f32 %v1307_v21  ;;  %vm1362_vm8 = vmor %vm1360_vm6, %vm1361_vm4 }
 0x3bb   : > { %v1357_v28 = vsub.f32 1.0, %v1356_v17 }
 0x3bc   : > { %v1337_v34 = vor.u32 1.1754944e-38, %v1336_v22  ;;  %vm1335_vm3 = vcmp.eq.f32.partialorder %v1334_v2, 8.507059e+37 }
 0x3bd   : > { %v1358_v33 = vmul.f32 %v1623_v20, %v1357_v28 }
 0x3be   : > { %v1625_v41 = vpop.eup %1624 }
 0x3bf   : > { %v1308_v1 = vadd.f32 1.0, %v1625_v41  ;;  %v1359_v40 = vadd.f32 %v1623_v20, %v1358_v33 }
 0x3c0   : > { %v1627_v23 = vpop.eup %1626 }
 0x3c1   : > { %1628 = vrcp.f32 %v1308_v1  ;;  %v1326_v24 = vmul.f32 %v1627_v23, %v1307_v21  ;;  %vm1331_vm0 = vweird.f32 %v1627_v23  ;;  %v1351_v39 = vand.u32 2147483648, %v1308_v1 }
 0x3c2   : > { %vm1332_vm2 = vmor %vm1330_vm1, %vm1331_vm0  ;;  %v1349_v44 = vand.u32 2147483647, %v1308_v1  ;;  %vm1345_vm7 = vweird.f32 %v1308_v1  ;;  %v1363_v48 = vsel %vm1362_vm8, %v1623_v20, %v1359_v40 }
 0x3c3   : > { %v1327_v25 = vsub.f32 1.0, %v1326_v24  ;;  %v1352_v0 = vor.u32 1.1754944e-38, %v1351_v39  ;;  %v1368_v14 = vsel %vm1365_vm11, %v1367_v52, %v1363_v48 }
 0x3c4   : > { %vm1350_vm10 = vcmp.eq.f32.partialorder %v1349_v44, 8.507059e+37 }
 0x3c5   : > { %v1328_v31 = vmul.f32 %v1627_v23, %v1327_v25 }
 0x3c7   : > { %v1629_v32 = vpop.eup %1628  ;;  %v1329_v27 = vadd.f32 %v1627_v23, %v1328_v31 }
 0x3c8   : > { %v1341_v35 = vmul.f32 %v1629_v32, %v1308_v1  ;;  %vm1346_vm5 = vweird.f32 %v1629_v32 }
 0x3c9   : > { %v1333_v36 = vsel %vm1332_vm2, %v1627_v23, %v1329_v27  ;;  %vm1347_vm9 = vmor %vm1345_vm7, %vm1346_vm5 }
 0x3ca   : > { %v1338_v37 = vsel %vm1335_vm3, %v1337_v34, %v1333_v36  ;;  %v1342_v38 = vsub.f32 1.0, %v1341_v35 }
 0x3cb   : > { %1377 = vperm.xlu1 %1610, %v1338_v37  }
 0x3cc   : > { %v1343_v42 = vmul.f32 %v1629_v32, %v1342_v38 }
 0x3ce   : > { %v1344_v47 = vadd.f32 %v1629_v32, %v1343_v42 }
 0x3d0   : > { %v1348_v51 = vsel %vm1347_vm9, %v1629_v32, %v1344_v47 }
 0x3d1   : > { %v1353_v53 = vsel %vm1350_vm10, %v1352_v0, %v1348_v51 }
 0x3d2   : > { %1382 = vperm.xlu2 %1609, %v1353_v53  }
 0x3d3   : > { %1387 = vperm.xlu1 %1610, %v1368_v14  }
 0x3da   : > { %v1373_v54 = vpop.permute.xlu2 %1372 }
 0x3db   : > { %v1390_v56 = vmul.f32 %v1630_v55, %v1373_v54  ;;  %v1391_v57 = vmul.f32 %v1631_v43, %v1373_v54 }
 0x3dd   : > { %1398 = vst [vmem:[%s244_s13] sm:$0xff] %v1390_v56 }
 0x3de   : > { %1399 = vst [vmem:[%s244_s13 + $0x8] sm:$0xff] %v1391_v57 }
 0x42c   : > { %v1383_v58 = vpop.permute.xlu2 %1382 }
 0x42d   : > { %v1394_v59 = vmul.f32 %v1632_v30, %v1383_v58  ;;  %v1395_v60 = vmul.f32 %v1633_v49, %v1383_v58 }
 0x42f   : > { %1402 = vst [vmem:[%s244_s13 + $0x20] sm:$0xff] %v1394_v59 }
 0x430   : > { %1403 = vst [vmem:[%s244_s13 + $0x28] sm:$0xff] %v1395_v60 }
 0x43d   : > { %v1378_v50 = vpop.permute.xlu1 %1377 }
 0x43e   : > { %v1392_v16 = vmul.f32 %v1634_v61, %v1378_v50  ;;  %v1393_v26 = vmul.f32 %v1635_v62, %v1378_v50 }
 0x440   : > { %1400 = vst [vmem:[%s244_s13 + $0x10] sm:$0xff] %v1392_v16 }
 0x441   : > { %1401 = vst [vmem:[%s244_s13 + $0x18] sm:$0xff] %v1393_v26 }
 0x445   : > { %v1388_v63 = vpop.permute.xlu1 %1387 }
 0x446   : > { %v1396_v4 = vmul.f32 %v1636_v3, %v1388_v63  ;;  %v1397_v6 = vmul.f32 %v1637_v5, %v1388_v63 }
 0x448   : > { %1404 = vst [vmem:[%s244_s13 + $0x30] sm:$0xff] %v1396_v4 }
 0x449   : > { %1405 = vst [vmem:[%s244_s13 + $0x38] sm:$0xff] %v1397_v6 }
 0x44a   : > { %1695 = shalt.err (!%p1692_p4)
}
 0x44b   : > { %s1739_s12 = smov 256   ;;  %s1740_s25 = smov 16  }
 0x44c   : > { %1517 = dma.vmem_to_hbm [thread:$0]  (%p1821_p11), %s1420_s26, 1024, %s1422_s8, %s1407_s28, %s1739_s12, %s1739_s12, %s1740_s25  }
 0x44d PF: > { %s1436_s13 = sand.u32 1, %s1722_s18   ;;  %p2295_p7 = scmp.ge.s32.totalorder %s1734_s21, 2 }
 0x44e   : > { %s1437_s15 = scalar_lea.sflag [#allocation4], %s1436_s13 }
 0x44f   : > { %p1524_p5 = pnand %p2295_p7, %p1825_p12 }
 0x451   : > { %p1525_p8 = pneg %p1524_p5 }
 0x453   : > { %1717 = dma.done.wait (%p1525_p8), %s1437_s15, 1024  }
 0x454   : > { %1719 = vsyncadd (%p1525_p8), %s1437_s15, 4294966272  ;;  %p18_p10 = scmp.ge.s32.totalorder %s1796_s24, 4   ;;  %s2296_s18 = smov %s1726_s19 }
 0x455   : > { %s2297_s19 = smov %s1730_s20  ;;  %s2298_s20 = smov %s1808_s27 }
 0x456   : > { %s2299_s21 = smov %s1796_s24  ;;  %20 = sbr.rel (!%p18_p10) target bundleno = 5 (0x5), region = 85 }
 0x45b   :  { %1443 = vsyncpa [#allocation3], 1 }
 0x45c   :  { %1445 = vsyncpa [#allocation3 + $0x1], 1 }
 0x45d   :  { %1446 = vsyncpa [#allocation4], 1 }
 0x45e   :  { %1448 = vsyncpa [#allocation4 + $0x1], 1 }

</bundles_post_ra>
